<compile_context>
chip_gen: v7x
topology: tpu7x:2x2x1
jax: 0.10.0
libtpu: 0.0.40
codegen_flags: <defaults>
</compile_context>

<pallas_src>
import jax
import jax.numpy as jnp
from jax.experimental import pallas as pl
from jax.experimental.pallas import tpu as pltpu

EPS = 1e-5  # nn.GroupNorm default


def _round_up(n, m):
    return ((n + m - 1) // m) * m


def _cdiv(a, b):
    return -(-a // b)


def _choose_tm(n_rows, block_rows):
    """Row-tile size: multiple of 8 sublanes, balanced blocks (tail padding
    bounded to <8 rows per block), and >=2 blocks once the problem is big
    enough that the extra per-step overhead is negligible (v7x megacore)."""
    max_tm = max(8, min(int(block_rows), 2048))
    n_blocks = _cdiv(n_rows, max_tm)
    if n_rows >= 128:
        n_blocks = max(n_blocks, 2)
    return _round_up(_cdiv(n_rows, n_blocks), 8)


def _prednet_kernel(x_ref,      # VMEM (tm, L) f32 activations
                    w1t_ref,    # VMEM (L, L)  weight1.T   (f32, or bf16 if L>=128)
                    w2t_ref,    # VMEM (L, L)  weight2.T
                    wot_ref,    # VMEM (L, O)  output_fc.T
                    vec_ref,    # VMEM (8, L)  packed: b1,g1,be1,b2,g2,be2,0,0
                    bo_ref,     # VMEM (1, O)  output_fc bias
                    o_ref):     # VMEM (tm, O)
    x = x_ref[...]                                   # f32 (tm, L)
    mm_dtype = w1t_ref.dtype                         # bf16 at production L
    inv_l = 1.0 / x.shape[-1]

    b1, g1, be1 = vec_ref[0:1, :], vec_ref[1:2, :], vec_ref[2:3, :]
    b2, g2, be2 = vec_ref[3:4, :], vec_ref[4:5, :], vec_ref[5:6, :]

    def group_norm(h, gamma, beta):
        # Fused single-pass statistics: sum and sum-of-squares are independent
        # XLU reductions; var = E[h^2] - mu^2 (f32, fine at 2e-3 tolerance).
        s1 = jnp.sum(h, axis=-1, keepdims=True)
        s2 = jnp.sum(h * h, axis=-1, keepdims=True)
        mu = s1 * inv_l
        var = jnp.maximum(s2 * inv_l - mu * mu, 0.0)
        return (h - mu) * jax.lax.rsqrt(var + EPS) * gamma + beta

    # ---- Linear1 -> GroupNorm(1, L) -> ReLU ------------------------------
    h = jnp.dot(x.astype(mm_dtype), w1t_ref[...],
                preferred_element_type=jnp.float32) + b1
    h = jnp.maximum(group_norm(h, g1, be1), 0.0)

    # ---- Linear2 -> GroupNorm(1, L) -> residual -> ReLU ------------------
    h2 = jnp.dot(h.astype(mm_dtype), w2t_ref[...],
                 preferred_element_type=jnp.float32) + b2
    h2 = jnp.maximum(group_norm(h2, g2, be2) + x, 0.0)

    # ---- output_fc -------------------------------------------------------
    out = jnp.dot(h2.astype(mm_dtype), wot_ref[...],
                  preferred_element_type=jnp.float32) + bo_ref[...]
    o_ref[...] = out.astype(o_ref.dtype)


def prednet_forward(prednet_in, params, *, block_rows=1024):
    """prednet_in: (N, latent_size) f32.  Returns (N, num_preds*2) f32."""
    N, L = prednet_in.shape
    O = params["output_fc_w"].shape[0]

    tm = _choose_tm(max(N, 1), block_rows)
    n_pad = _round_up(N, tm)
    x = prednet_in.astype(jnp.float32)
    if n_pad != N:
        x = jnp.pad(x, ((0, n_pad - N), (0, 0)))     # single pad, no scatter

    # bf16 MXU operands only at production latent sizes; GN stays f32.
    mm_dtype = jnp.bfloat16 if L >= 128 else jnp.float32
    w1t = params["weight1_w"].T.astype(mm_dtype)
    w2t = params["weight2_w"].T.astype(mm_dtype)
    wot = params["output_fc_w"].T.astype(mm_dtype)

    # Pack the six (L,) vectors into one (8, L) f32 block (single DMA/tile).
    vec = jnp.stack([params["weight1_b"], params["norm1_w"], params["norm1_b"],
                     params["weight2_b"], params["norm2_w"], params["norm2_b"]],
                    axis=0).astype(jnp.float32)
    vec = jnp.pad(vec, ((0, 2), (0, 0)))
    bo = params["output_fc_b"].reshape(1, O).astype(jnp.float32)

    const = lambda i: (0, 0)
    resident = pl.Buffered(1)   # constant blocks: no double-buffering needed
    out = pl.pallas_call(
        _prednet_kernel,
        out_shape=jax.ShapeDtypeStruct((n_pad, O), jnp.float32),
        grid_spec=pltpu.PrefetchScalarGridSpec(
            num_scalar_prefetch=0,
            grid=(n_pad // tm,),
            in_specs=[
                pl.BlockSpec((tm, L), lambda i: (i, 0)),              # activations
                pl.BlockSpec((L, L), const, pipeline_mode=resident),  # weight1.T
                pl.BlockSpec((L, L), const, pipeline_mode=resident),  # weight2.T
                pl.BlockSpec((L, O), const, pipeline_mode=resident),  # output_fc.T
                pl.BlockSpec((8, L), const, pipeline_mode=resident),  # packed vectors
                pl.BlockSpec((1, O), const, pipeline_mode=resident),  # output_fc bias
            ],
            out_specs=pl.BlockSpec((tm, O), lambda i: (i, 0)),
        ),
        compiler_params=pltpu.CompilerParams(
            dimension_semantics=("parallel",)),
    )(x, w1t, w2t, wot, vec, bo)
    return out[:N]


def _reference_forward(x, params):
    """Plain-JAX reference matching the PyTorch PredictionNet math."""
    def gn(h, g, b):
        mu = jnp.mean(h, axis=-1, keepdims=True)
        var = jnp.mean((h - mu) ** 2, axis=-1, keepdims=True)
        return (h - mu) / jnp.sqrt(var + EPS) * g + b

    h = x @ params["weight1_w"].T + params["weight1_b"]
    h = gn(h, params["norm1_w"], params["norm1_b"])
    h = jnp.maximum(h, 0.0)
    h = h @ params["weight2_w"].T + params["weight2_b"]
    h = gn(h, params["norm2_w"], params["norm2_b"])
    h = h + x
    h = jnp.maximum(h, 0.0)
    return h @ params["output_fc_w"].T + params["output_fc_b"]


if __name__ == "__main__":
    LATENT_SIZE = 32        # args.latent_size (small test size)
    NUM_PREDS = 4           # args.num_preds  -> output dim = 8
    N_AGENTS = 10           # rows in prednet_in

    key = jax.random.PRNGKey(0)
    ks = jax.random.split(key, 8)
    L, O = LATENT_SIZE, NUM_PREDS * 2

    params = {
        "weight1_w": 0.1 * jax.random.normal(ks[0], (L, L), jnp.float32),
        "weight1_b": 0.1 * jax.random.normal(ks[1], (L,), jnp.float32),
        "norm1_w": 1.0 + 0.1 * jax.random.normal(ks[2], (L,), jnp.float32),
        "norm1_b": 0.1 * jax.random.normal(ks[3], (L,), jnp.float32),
        "weight2_w": 0.1 * jax.random.normal(ks[4], (L, L), jnp.float32),
        "weight2_b": 0.1 * jax.random.normal(ks[5], (L,), jnp.float32),
        "norm2_w": 1.0 + 0.1 * jax.random.normal(ks[6], (L,), jnp.float32),
        "norm2_b": 0.1 * jax.random.normal(ks[7], (L,), jnp.float32),
        "output_fc_w": 0.1 * jax.random.normal(ks[0], (O, L), jnp.float32),
        "output_fc_b": 0.1 * jax.random.normal(ks[1], (O,), jnp.float32),
    }

    prednet_in = jax.random.normal(jax.random.PRNGKey(1), (N_AGENTS, L),
                                   jnp.float32)

    out = prednet_forward(prednet_in, params)
    out = jax.block_until_ready(out)

    ref = _reference_forward(prednet_in, params)
    assert out.shape == (N_AGENTS, O), out.shape
    assert jnp.allclose(out, ref, atol=2e-3, rtol=2e-3), \
        float(jnp.abs(out - ref).max())

    print("KERNEL_OK")
</pallas_src>

<mosaic_0001>
module attributes {stable_mosaic.version = 11 : i64} {
  func.func @_prednet_kernel(%arg0: i32, %arg1: memref<16x32xf32, #tpu.memory_space<vmem>>, %arg2: memref<32x32xf32, #tpu.memory_space<vmem>>, %arg3: memref<32x32xf32, #tpu.memory_space<vmem>>, %arg4: memref<32x8xf32, #tpu.memory_space<vmem>>, %arg5: memref<8x32xf32, #tpu.memory_space<vmem>>, %arg6: memref<1x8xf32, #tpu.memory_space<vmem>>, %arg7: memref<16x8xf32, #tpu.memory_space<vmem>>) attributes {dimension_semantics = [#tpu.dimension_semantics<parallel>], iteration_bounds = array<i64: 1>, scalar_prefetch = 0 : i64, scratch_operands = 0 : i64, tpu.core_type = #tpu.core_type<tc>, window_params = [{transform_indices = @transform_0, window_bounds = array<i64: 16, 32>}, {pipeline_mode = #tpu.pipeline_mode<synchronous>, transform_indices = @transform_1, window_bounds = array<i64: 32, 32>}, {pipeline_mode = #tpu.pipeline_mode<synchronous>, transform_indices = @transform_2, window_bounds = array<i64: 32, 32>}, {pipeline_mode = #tpu.pipeline_mode<synchronous>, transform_indices = @transform_3, window_bounds = array<i64: 32, 8>}, {pipeline_mode = #tpu.pipeline_mode<synchronous>, transform_indices = @transform_4, window_bounds = array<i64: 8, 32>}, {pipeline_mode = #tpu.pipeline_mode<synchronous>, transform_indices = @transform_5, window_bounds = array<i64: 1, 8>}, {transform_indices = @transform_6, window_bounds = array<i64: 16, 8>}]} {
    %c0 = arith.constant 0 : index
    %c0_0 = arith.constant 0 : index
    %0 = vector.load %arg1[%c0, %c0_0] : memref<16x32xf32, #tpu.memory_space<vmem>>, vector<16x32xf32>
    %c0_1 = arith.constant 0 : index
    %c0_2 = arith.constant 0 : index
    %1 = vector.load %arg5[%c0_1, %c0_2] : memref<8x32xf32, #tpu.memory_space<vmem>>, vector<1x32xf32>
    %c1 = arith.constant 1 : index
    %c0_3 = arith.constant 0 : index
    %2 = vector.load %arg5[%c1, %c0_3] : memref<8x32xf32, #tpu.memory_space<vmem>>, vector<1x32xf32>
    %c2 = arith.constant 2 : index
    %c0_4 = arith.constant 0 : index
    %3 = vector.load %arg5[%c2, %c0_4] : memref<8x32xf32, #tpu.memory_space<vmem>>, vector<1x32xf32>
    %c3 = arith.constant 3 : index
    %c0_5 = arith.constant 0 : index
    %4 = vector.load %arg5[%c3, %c0_5] : memref<8x32xf32, #tpu.memory_space<vmem>>, vector<1x32xf32>
    %c4 = arith.constant 4 : index
    %c0_6 = arith.constant 0 : index
    %5 = vector.load %arg5[%c4, %c0_6] : memref<8x32xf32, #tpu.memory_space<vmem>>, vector<1x32xf32>
    %c5 = arith.constant 5 : index
    %c0_7 = arith.constant 0 : index
    %6 = vector.load %arg5[%c5, %c0_7] : memref<8x32xf32, #tpu.memory_space<vmem>>, vector<1x32xf32>
    %c0_8 = arith.constant 0 : index
    %c0_9 = arith.constant 0 : index
    %7 = vector.load %arg2[%c0_8, %c0_9] : memref<32x32xf32, #tpu.memory_space<vmem>>, vector<32x32xf32>
    %cst = arith.constant dense<0.000000e+00> : vector<16x32xf32>
    %8 = tpu.matmul %0, %7, %cst {dimension_numbers = #tpu.dot_dimension_numbers<[1], [0], [0], [1], [0, 0, 1, 1], [], []>} : vector<16x32xf32>, vector<32x32xf32>, vector<16x32xf32> -> vector<16x32xf32>
    %9 = vector.broadcast %1 : vector<1x32xf32> to vector<16x32xf32>
    %10 = arith.addf %8, %9 : vector<16x32xf32>
    %cst_10 = arith.constant dense<0.000000e+00> : vector<16xf32>
    %11 = vector.multi_reduction <add>, %10, %cst_10 [1] : vector<16x32xf32> to vector<16xf32>
    %12 = vector.shape_cast %11 : vector<16xf32> to vector<16x1xf32>
    %13 = arith.mulf %10, %10 : vector<16x32xf32>
    %cst_11 = arith.constant dense<0.000000e+00> : vector<16xf32>
    %14 = vector.multi_reduction <add>, %13, %cst_11 [1] : vector<16x32xf32> to vector<16xf32>
    %15 = vector.shape_cast %14 : vector<16xf32> to vector<16x1xf32>
    %cst_12 = arith.constant 3.125000e-02 : f32
    %16 = vector.broadcast %cst_12 : f32 to vector<16x1xf32>
    %17 = arith.mulf %12, %16 : vector<16x1xf32>
    %cst_13 = arith.constant 3.125000e-02 : f32
    %18 = vector.broadcast %cst_13 : f32 to vector<16x1xf32>
    %19 = arith.mulf %15, %18 : vector<16x1xf32>
    %20 = arith.mulf %17, %17 : vector<16x1xf32>
    %21 = arith.subf %19, %20 : vector<16x1xf32>
    %cst_14 = arith.constant 0.000000e+00 : f32
    %22 = vector.broadcast %cst_14 : f32 to vector<16x1xf32>
    %23 = arith.maximumf %21, %22 : vector<16x1xf32>
    %24 = vector.broadcast %17 : vector<16x1xf32> to vector<16x32xf32>
    %25 = arith.subf %10, %24 : vector<16x32xf32>
    %cst_15 = arith.constant 9.99999974E-6 : f32
    %26 = vector.broadcast %cst_15 : f32 to vector<16x1xf32>
    %27 = arith.addf %23, %26 : vector<16x1xf32>
    %28 = math.rsqrt %27 : vector<16x1xf32>
    %29 = vector.broadcast %28 : vector<16x1xf32> to vector<16x32xf32>
    %30 = arith.mulf %25, %29 : vector<16x32xf32>
    %31 = vector.broadcast %2 : vector<1x32xf32> to vector<16x32xf32>
    %32 = arith.mulf %30, %31 : vector<16x32xf32>
    %33 = vector.broadcast %3 : vector<1x32xf32> to vector<16x32xf32>
    %34 = arith.addf %32, %33 : vector<16x32xf32>
    %cst_16 = arith.constant 0.000000e+00 : f32
    %35 = vector.broadcast %cst_16 : f32 to vector<16x32xf32>
    %36 = arith.maximumf %34, %35 : vector<16x32xf32>
    %c0_17 = arith.constant 0 : index
    %c0_18 = arith.constant 0 : index
    %37 = vector.load %arg3[%c0_17, %c0_18] : memref<32x32xf32, #tpu.memory_space<vmem>>, vector<32x32xf32>
    %cst_19 = arith.constant dense<0.000000e+00> : vector<16x32xf32>
    %38 = tpu.matmul %36, %37, %cst_19 {dimension_numbers = #tpu.dot_dimension_numbers<[1], [0], [0], [1], [0, 0, 1, 1], [], []>} : vector<16x32xf32>, vector<32x32xf32>, vector<16x32xf32> -> vector<16x32xf32>
    %39 = vector.broadcast %4 : vector<1x32xf32> to vector<16x32xf32>
    %40 = arith.addf %38, %39 : vector<16x32xf32>
    %cst_20 = arith.constant dense<0.000000e+00> : vector<16xf32>
    %41 = vector.multi_reduction <add>, %40, %cst_20 [1] : vector<16x32xf32> to vector<16xf32>
    %42 = vector.shape_cast %41 : vector<16xf32> to vector<16x1xf32>
    %43 = arith.mulf %40, %40 : vector<16x32xf32>
    %cst_21 = arith.constant dense<0.000000e+00> : vector<16xf32>
    %44 = vector.multi_reduction <add>, %43, %cst_21 [1] : vector<16x32xf32> to vector<16xf32>
    %45 = vector.shape_cast %44 : vector<16xf32> to vector<16x1xf32>
    %cst_22 = arith.constant 3.125000e-02 : f32
    %46 = vector.broadcast %cst_22 : f32 to vector<16x1xf32>
    %47 = arith.mulf %42, %46 : vector<16x1xf32>
    %cst_23 = arith.constant 3.125000e-02 : f32
    %48 = vector.broadcast %cst_23 : f32 to vector<16x1xf32>
    %49 = arith.mulf %45, %48 : vector<16x1xf32>
    %50 = arith.mulf %47, %47 : vector<16x1xf32>
    %51 = arith.subf %49, %50 : vector<16x1xf32>
    %cst_24 = arith.constant 0.000000e+00 : f32
    %52 = vector.broadcast %cst_24 : f32 to vector<16x1xf32>
    %53 = arith.maximumf %51, %52 : vector<16x1xf32>
    %54 = vector.broadcast %47 : vector<16x1xf32> to vector<16x32xf32>
    %55 = arith.subf %40, %54 : vector<16x32xf32>
    %cst_25 = arith.constant 9.99999974E-6 : f32
    %56 = vector.broadcast %cst_25 : f32 to vector<16x1xf32>
    %57 = arith.addf %53, %56 : vector<16x1xf32>
    %58 = math.rsqrt %57 : vector<16x1xf32>
    %59 = vector.broadcast %58 : vector<16x1xf32> to vector<16x32xf32>
    %60 = arith.mulf %55, %59 : vector<16x32xf32>
    %61 = vector.broadcast %5 : vector<1x32xf32> to vector<16x32xf32>
    %62 = arith.mulf %60, %61 : vector<16x32xf32>
    %63 = vector.broadcast %6 : vector<1x32xf32> to vector<16x32xf32>
    %64 = arith.addf %62, %63 : vector<16x32xf32>
    %65 = arith.addf %64, %0 : vector<16x32xf32>
    %cst_26 = arith.constant 0.000000e+00 : f32
    %66 = vector.broadcast %cst_26 : f32 to vector<16x32xf32>
    %67 = arith.maximumf %65, %66 : vector<16x32xf32>
    %c0_27 = arith.constant 0 : index
    %c0_28 = arith.constant 0 : index
    %68 = vector.load %arg4[%c0_27, %c0_28] : memref<32x8xf32, #tpu.memory_space<vmem>>, vector<32x8xf32>
    %cst_29 = arith.constant dense<0.000000e+00> : vector<16x8xf32>
    %69 = tpu.matmul %67, %68, %cst_29 {dimension_numbers = #tpu.dot_dimension_numbers<[1], [0], [0], [1], [0, 0, 1, 1], [], []>} : vector<16x32xf32>, vector<32x8xf32>, vector<16x8xf32> -> vector<16x8xf32>
    %c0_30 = arith.constant 0 : index
    %c0_31 = arith.constant 0 : index
    %70 = vector.load %arg6[%c0_30, %c0_31] : memref<1x8xf32, #tpu.memory_space<vmem>>, vector<1x8xf32>
    %71 = vector.broadcast %70 : vector<1x8xf32> to vector<16x8xf32>
    %72 = arith.addf %69, %71 : vector<16x8xf32>
    %c0_32 = arith.constant 0 : index
    %c0_33 = arith.constant 0 : index
    %73 = vector.load %arg7[%c0_32, %c0_33] : memref<16x8xf32, #tpu.memory_space<vmem>>, vector<16x8xf32>
    tpu.vector_store %arg7[%c0_32, %c0_33], %72 {strides = array<i32>} : memref<16x8xf32, #tpu.memory_space<vmem>>, vector<16x8xf32>,
    return
  }
  func.func @transform_0(%arg0: i32) -> (i32, i32) {
    %c0_i32 = arith.constant 0 : i32
    %c0_i32_0 = arith.constant 0 : i32
    return %arg0, %c0_i32 : i32, i32
  }
  func.func @transform_1(%arg0: i32) -> (i32, i32) {
    %c0_i32 = arith.constant 0 : i32
    %c0_i32_0 = arith.constant 0 : i32
    %c0_i32_1 = arith.constant 0 : i32
    return %c0_i32, %c0_i32_0 : i32, i32
  }
  func.func @transform_2(%arg0: i32) -> (i32, i32) {
    %c0_i32 = arith.constant 0 : i32
    %c0_i32_0 = arith.constant 0 : i32
    %c0_i32_1 = arith.constant 0 : i32
    return %c0_i32, %c0_i32_0 : i32, i32
  }
  func.func @transform_3(%arg0: i32) -> (i32, i32) {
    %c0_i32 = arith.constant 0 : i32
    %c0_i32_0 = arith.constant 0 : i32
    %c0_i32_1 = arith.constant 0 : i32
    return %c0_i32, %c0_i32_0 : i32, i32
  }
  func.func @transform_4(%arg0: i32) -> (i32, i32) {
    %c0_i32 = arith.constant 0 : i32
    %c0_i32_0 = arith.constant 0 : i32
    %c0_i32_1 = arith.constant 0 : i32
    return %c0_i32, %c0_i32_0 : i32, i32
  }
  func.func @transform_5(%arg0: i32) -> (i32, i32) {
    %c0_i32 = arith.constant 0 : i32
    %c0_i32_0 = arith.constant 0 : i32
    %c0_i32_1 = arith.constant 0 : i32
    return %c0_i32, %c0_i32_0 : i32, i32
  }
  func.func @transform_6(%arg0: i32) -> (i32, i32) {
    %c0_i32 = arith.constant 0 : i32
    %c0_i32_0 = arith.constant 0 : i32
    return %arg0, %c0_i32 : i32, i32
  }
}

</mosaic_0001>

<bundles_post_ra>
// kernel: tpu_custom_call.1
= control target key start
LH: loop header
LB: loop body
LE: loop exit
PB: predicated region body
PF: predicated region fallthrough
CT: control target
= control target key end

     0   :  { %11 = vsyncpa [#allocation3], 0  ;;  %s717_s0 = inlined_call_operand.hbm [shape: f32[16,32], index: 0, kind: input, shape index: {}]   ;;  %s718_s1 = inlined_call_operand.vmem [shape: f32[32,32], index: 1, kind: input, shape index: {}]   ;;  %s719_s2 = inlined_call_operand.hbm [shape: f32[32,32], index: 2, kind: input, shape index: {}]   ;;  %s720_s3 = inlined_call_operand.vmem [shape: f32[32,8], index: 3, kind: input, shape index: {}]   ;;  %s721_s4 = inlined_call_operand.vmem [shape: f32[8,32], index: 4, kind: input, shape index: {}]   ;;  %s722_s5 = inlined_call_operand.vmem [shape: f32[1,8], index: 5, kind: input, shape index: {}]   ;;  %s723_s6 = inlined_call_operand.vmem [shape: f32[16,8], index: 6, kind: output, shape index: {}]  }
   0x1   :  { %12 = vsyncpa [#allocation5], 0  ;;  %s581_s21 = smov [#allocation2]   ;;  %s533_s25 = scalar_lea.hbm %s717_s0, 256 }
   0x2   :  { %s18_s22 = sshll.u32 %s581_s21, 4  ;;  %p534_p0 = scmp.ne.s32.totalorder %s717_s0, %s533_s25  ;;  %s19_s22 = int_to_ptr.vmem [resolvable:$true] %s18_s22 }
   0x3   :  { %p537_p1 = scmp.lt.u32.totalorder %s533_s25, %s717_s0 }
   0x5   :  { %p539_p2 = pnand %p537_p1, %p534_p0 }
   0x7   :  { %542 = shalt.err (!%p539_p2)
}
   0x8   :  { %s543_s30 = scalar_lea.vmem %s19_s22, 256  ;;  %p548_p4 = scmp.lt.s32.totalorder %s19_s22, %s19_s22 }
   0x9   :  { %p544_p3 = scmp.ne.s32.totalorder %s19_s22, %s543_s30  ;;  %p549_p5 = scmp.lt.s32.totalorder %s543_s30, %s543_s30 }
   0xb   :  { %p550_p6 = por %p549_p5, %p548_p4 }
   0xd   :  { %p551_p7 = pnand %p550_p6, %p544_p3 }
   0xf   :  { %554 = shalt.err (!%p551_p7)
}
  0x10   :  { %s582_s7 = smov 128   ;;  %s583_s8 = smov 8  }
  0x11   :  { %24 = dma.hbm_to_vmem [thread:$0]  %s717_s0, 256, %s19_s22, [#allocation3], %s582_s7, %s582_s7, %s583_s8  }
  0x12   :  { %s584_s11 = smov [#allocation4]   ;;  %s555_s15 = scalar_lea.hbm %s719_s2, 512 }
  0x13   :  { %s32_s12 = sshll.u32 %s584_s11, 4  ;;  %p556_p8 = scmp.ne.s32.totalorder %s719_s2, %s555_s15  ;;  %s33_s12 = int_to_ptr.vmem [resolvable:$true] %s32_s12 }
  0x14   :  { %p559_p9 = scmp.lt.u32.totalorder %s555_s15, %s719_s2 }
  0x16   :  { %p561_p10 = pnand %p559_p9, %p556_p8 }
  0x18   :  { %564 = shalt.err (!%p561_p10)
}
  0x19   :  { %s565_s20 = scalar_lea.vmem %s33_s12, 512  ;;  %p570_p12 = scmp.lt.s32.totalorder %s33_s12, %s33_s12 }
  0x1a   :  { %p566_p11 = scmp.ne.s32.totalorder %s33_s12, %s565_s20  ;;  %p571_p13 = scmp.lt.s32.totalorder %s565_s20, %s565_s20 }
  0x1c   :  { %p572_p0 = por %p571_p13, %p570_p12 }
  0x1e   :  { %p573_p1 = pnand %p572_p0, %p566_p11 }
  0x20   :  { %576 = shalt.err (!%p573_p1)
}
  0x21   :  { %38 = dma.hbm_to_vmem [thread:$0]  %s719_s2, 512, %s33_s12, [#allocation5], %s582_s7, %s582_s7, %s583_s8  }
  0x22   :  { %577 = dma.done.wait [#allocation3], 256  }
  0x23   :  { %578 = vsyncadd [#allocation3], 4294967040 }
  0x24   :  { %579 = dma.done.wait [#allocation5], 512  }
  0x25   :  { %580 = vsyncadd [#allocation5], 4294966784  ;;  %vm67_vm0 = vcmask 261120   ;;  %v59_v0 = vld [vmem:[%s718_s1] sm:$0xff]  ;;  %v60_v1 = vld [vmem:[%s718_s1 + $0x8] sm:$0xff]  ;;  %vm424_vm1 = vcmask 64512  }
  0x26   :  { %v61_v2 = vld [vmem:[%s718_s1 + $0x10] sm:$0xff]  ;;  %v497_v3 = vpack.c.bf16 %v60_v1, %v59_v0  ;;  %v62_v4 = vld [vmem:[%s718_s1 + $0x18] sm:$0xff]  ;;  %v656_v5 = vld [vmem:[#allocation2] sm:$0xff] }
  0x27   :  { %v501_v6 = vpack.c.bf16 %v62_v4, %v61_v2  ;;  %472 = vmatprep.mubr.msk.f32.mxu0 %vm67_vm0, %v656_v5  ;;  %v660_v7 = vld [vmem:[#allocation2 + $0x8] sm:$0xff]  ;;  %v433_v8 = vld [vmem:[%s721_s4] ss:$0 sm:$0xff]  ;;  %v195_v19 = vld [vmem:[#allocation4] sm:$0xff] }
  0x28   :  { %498 = vmatprep.subr.bf16.mxu0 %v497_v3  ;;  %v196_v20 = vld [vmem:[#allocation4 + $0x8] sm:$0xff]  ;;  %v197_v21 = vld [vmem:[#allocation4 + $0x10] sm:$0xff]  ;;  %v198_v23 = vld [vmem:[#allocation4 + $0x18] sm:$0xff] }
  0x29   :  { %500 = vmatpush3.bf16.msra.mxu0 %v497_v3  ;;  %v505_v22 = vpack.c.bf16 %v196_v20, %v195_v19  ;;  %v509_v24 = vpack.c.bf16 %v198_v23, %v197_v21  ;;  %v436_v43 = vld [vmem:[%s721_s4 + $0x1] ss:$0 sm:$0xff]  ;;  %v437_v45 = vld [vmem:[%s721_s4 + $0x2] ss:$0 sm:$0xff]  ;;  %v438_v55 = vld [vmem:[%s721_s4 + $0x3] ss:$0 sm:$0xff] }
  0x2a   :  { %502 = vmatprep.subr.bf16.mxu0 %v501_v6  ;;  %v332_v2 = vld [vmem:[%s720_s3] sm:$0xff]  ;;  %v333_v3 = vld [vmem:[%s720_s3 + $0x8] sm:$0xff]  ;;  %v334_v4 = vld [vmem:[%s720_s3 + $0x10] sm:$0xff] }
  0x2b   :  { %506 = vmatprep.subr.bf16.mxu1 %v505_v22 }
  0x2c   :  { %508 = vmatpush3.bf16.msra.mxu1 %v505_v22 }
  0x2d   :  { %504 = vmatpush3.bf16.msra.mxu0 %v501_v6  ;;  %510 = vmatprep.subr.bf16.mxu1 %v509_v24  ;;  %v513_v6 = vpack.c.bf16 %v333_v3, %v332_v2 }
  0x2f   :  { %514 = vmatprep.subr.bf16.mxu0 %v513_v6 }
  0x30   :  { %473 = vmatmul.mubr.msk.f32.vlgmr.msra.gmra.mrb[0].mxu0 %vm67_vm0, %v660_v7  ;;  %512 = vmatpush3.bf16.msra.mxu1 %v509_v24 }
  0x31   :  { %516 = vmatpush3.bf16.msra.mxu0 %v513_v6 }
 0x103   :  { %v474_v9 = vpop.f32.mrb[0].mxu0 }
 0x104   :  { %v140_v10 = vpop.f32.mrb[1].mxu0  ;;  %v146_v11 = vadd.f32 %v474_v9, %v433_v8 }
 0x105   :  { %v141_v12 = vadd.f32 %v433_v8, %v140_v10  ;;  %v335_v8 = vld [vmem:[%s720_s3 + $0x18] sm:$0xff] }
 0x106   :  { %v156_v16 = vmul.f32 %v146_v11, %v146_v11  ;;  %v152_v17 = vsel %vm67_vm0, %v146_v11, 0.0  ;;  %v517_v9 = vpack.c.bf16 %v335_v8, %v334_v4 }
 0x107   :  { %v149_v13 = vsel %vm67_vm0, %v141_v12, 0.0  ;;  %v155_v14 = vmul.f32 %v141_v12, %v141_v12 }
 0x108   :  { %150 = vadd.xlane.f32.xlu0 %v149_v13  ;;  %v160_v18 = vsel %vm67_vm0, %v156_v16, 0.0  ;;  %518 = vmatprep.subr.bf16.mxu0 %v517_v9 }
 0x109   :  { %v157_v15 = vsel %vm67_vm0, %v155_v14, 0.0  ;;  %520 = vmatpush3.bf16.msra.mxu0 %v517_v9 }
 0x10a   :  { %158 = vadd.xlane.f32.xlu1 %v157_v15 }
 0x10c   :  { %153 = vadd.xlane.f32.xlu0 %v152_v17 }
 0x10e   :  { %161 = vadd.xlane.f32.xlu1 %v160_v18 }
 0x195   :  { %v151_v25 = vpop.xlane.xlu0 %150 }
 0x196   :  { %v163_v26 = vmul.f32 0.03125, %v151_v25 }
 0x197   :  { %v159_v27 = vpop.xlane.xlu1 %158 }
 0x198   :  { %v167_v28 = vmul.f32 %v163_v26, %v163_v26  ;;  %v165_v29 = vmul.f32 0.03125, %v159_v27  ;;  %v173_v41 = vsub.f32 %v141_v12, %v163_v26 }
 0x199   :  { %v154_v30 = vpop.xlane.xlu0 %153 }
 0x19a   :  { %v169_v31 = vsub.f32 %v165_v29, %v167_v28  ;;  %v164_v32 = vmul.f32 0.03125, %v154_v30  ;;  %v441_v29 = vld [vmem:[%s721_s4 + $0x4] ss:$0 sm:$0xff] }
 0x19b   :  { %v162_v33 = vpop.xlane.xlu1 %161 }
 0x19c   :  { %v171_v34 = vmax.f32 %v169_v31, 0.0  ;;  %v168_v35 = vmul.f32 %v164_v32, %v164_v32  ;;  %v166_v36 = vmul.f32 0.03125, %v162_v33  ;;  %v174_v46 = vsub.f32 %v146_v11, %v164_v32  ;;  %v442_v32 = vld [vmem:[%s721_s4 + $0x5] ss:$0 sm:$0xff] }
 0x19e   :  { %v175_v37 = vadd.f32 1e-05, %v171_v34  ;;  %v170_v38 = vsub.f32 %v166_v36, %v168_v35 }
 0x1a0   :  { %525 = vrsqrt.f32 %v175_v37  ;;  %v172_v39 = vmax.f32 %v170_v38, 0.0 }
 0x1a2   :  { %v176_v40 = vadd.f32 1e-05, %v172_v39 }
 0x1a4   :  { %527 = vrsqrt.f32 %v176_v40 }
 0x1aa   :  { %v526_v42 = vpop.eup %525 }
 0x1ab   :  { %v179_v44 = vmul.f32 %v526_v42, %v173_v41  ;;  %v443_v42 = vld [vmem:[%s722_s5] ss:$0 sm:$0xff] }
 0x1ad   :  { %v185_v47 = vmul.f32 %v436_v43, %v179_v44 }
 0x1ae   :  { %v528_v48 = vpop.eup %527 }
 0x1af   :  { %v180_v49 = vmul.f32 %v528_v48, %v174_v46  ;;  %v191_v50 = vadd.f32 %v437_v45, %v185_v47 }
 0x1b1   :  { %v186_v51 = vmul.f32 %v436_v43, %v180_v49  ;;  %v193_v52 = vmax.f32 %v191_v50, 0.0 }
 0x1b3   :  { %v192_v53 = vadd.f32 %v437_v45, %v186_v51  ;;  %483 = vmatprep.mubr.msk.f32.mxu1 %vm67_vm0, %v193_v52 }
 0x1b5   :  { %v194_v54 = vmax.f32 %v192_v53, 0.0 }
 0x1b7   :  { %484 = vmatmul.mubr.msk.f32.vlgmr.msra.gmra.mrb[0].mxu1 %vm67_vm0, %v194_v54 }
 0x28a   :  { %v485_v56 = vpop.f32.mrb[0].mxu1 }
 0x28b   :  { %v281_v57 = vadd.f32 %v485_v56, %v438_v55  ;;  %v275_v58 = vpop.f32.mrb[1].mxu1 }
 0x28c   :  { %v276_v59 = vadd.f32 %v438_v55, %v275_v58 }
 0x28d   :  { %v287_v60 = vsel %vm67_vm0, %v281_v57, 0.0  ;;  %v291_v61 = vmul.f32 %v281_v57, %v281_v57 }
 0x28e   :  { %288 = vadd.xlane.f32.xlu1 %v287_v60  ;;  %v284_v62 = vsel %vm67_vm0, %v276_v59, 0.0  ;;  %v290_v63 = vmul.f32 %v276_v59, %v276_v59 }
 0x28f   :  { %285 = vadd.xlane.f32.xlu0 %v284_v62  ;;  %v295_v0 = vsel %vm67_vm0, %v291_v61, 0.0 }
 0x290   :  { %v292_v1 = vsel %vm67_vm0, %v290_v63, 0.0 }
 0x292   :  { %296 = vadd.xlane.f32.xlu1 %v295_v0 }
 0x293   :  { %293 = vadd.xlane.f32.xlu0 %v292_v1 }
 0x31b   :  { %v289_v10 = vpop.xlane.xlu1 %288 }
 0x31c   :  { %v299_v11 = vmul.f32 0.03125, %v289_v10  ;;  %v286_v12 = vpop.xlane.xlu0 %285 }
 0x31d   :  { %v298_v13 = vmul.f32 0.03125, %v286_v12 }
 0x31e   :  { %v303_v15 = vmul.f32 %v299_v11, %v299_v11  ;;  %v309_v26 = vsub.f32 %v281_v57, %v299_v11 }
 0x31f   :  { %v297_v14 = vpop.xlane.xlu1 %296  ;;  %v302_v18 = vmul.f32 %v298_v13, %v298_v13  ;;  %v308_v28 = vsub.f32 %v276_v59, %v298_v13 }
 0x320   :  { %v301_v16 = vmul.f32 0.03125, %v297_v14  ;;  %v294_v17 = vpop.xlane.xlu0 %293 }
 0x321   :  { %v300_v19 = vmul.f32 0.03125, %v294_v17 }
 0x322   :  { %v305_v20 = vsub.f32 %v301_v16, %v303_v15 }
 0x323   :  { %v304_v21 = vsub.f32 %v300_v19, %v302_v18 }
 0x324   :  { %v307_v22 = vmax.f32 %v305_v20, 0.0 }
 0x325   :  { %v306_v23 = vmax.f32 %v304_v21, 0.0 }
 0x326   :  { %v311_v24 = vadd.f32 1e-05, %v307_v22 }
 0x327   :  { %v310_v25 = vadd.f32 1e-05, %v306_v23 }
 0x328   :  { %529 = vrsqrt.f32 %v311_v24 }
 0x329   :  { %531 = vrsqrt.f32 %v310_v25 }
 0x332   :  { %v530_v27 = vpop.eup %529 }
 0x333   :  { %v532_v30 = vpop.eup %531  ;;  %v315_v31 = vmul.f32 %v530_v27, %v309_v26 }
 0x334   :  { %v314_v33 = vmul.f32 %v532_v30, %v308_v28 }
 0x335   :  { %v321_v34 = vmul.f32 %v441_v29, %v315_v31 }
 0x336   :  { %v320_v35 = vmul.f32 %v441_v29, %v314_v33 }
 0x337   :  { %v327_v36 = vadd.f32 %v442_v32, %v321_v34 }
 0x338   :  { %v326_v37 = vadd.f32 %v442_v32, %v320_v35 }
 0x339   :  { %v329_v38 = vadd.f32 %v327_v36, %v660_v7 }
 0x33a   :  { %v328_v39 = vadd.f32 %v326_v37, %v656_v5 }
 0x33b   :  { %v331_v41 = vmax.f32 %v329_v38, 0.0 }
 0x33c   :  { %v330_v40 = vmax.f32 %v328_v39, 0.0 }
 0x33e   :  { %494 = vmatprep.mubr.msk.f32.mxu0 %vm67_vm0, %v330_v40 }
 0x33f   :  { %495 = vmatmul.mubr.msk.f32.vlgmr.msra.gmra.mrb[2].mxu0 %vm67_vm0, %v331_v41 }
 0x412   :  { %v496_v43 = vpop.f32.mrb[2].mxu0 }
 0x413   :  { %v421_v44 = vadd.f32 %v496_v43, %v443_v42  ;;  %v415_v45 = vpop.f32.mrb[3].mxu0 }
 0x414   :  { %v416_v46 = vadd.f32 %v443_v42, %v415_v45 }
 0x415   :  { %426 = vst.msk [vmem:[%s723_s6 + $0x8] sm:$0xff] %vm424_vm1, %v421_v44 }
 0x416   :  { %425 = vst.msk [vmem:[%s723_s6] sm:$0xff] %vm424_vm1, %v416_v46 }
 0x417   :  { %431 = vsyncpa [#allocation3], 1 }
 0x418   :  { %432 = vsyncpa [#allocation5], 1 }

</bundles_post_ra>
